<compile_context>
chip_gen: v6e
topology: v6e:2x2x1
jax: 0.10.0
libtpu: 0.0.40
codegen_flags: <defaults>
</compile_context>

<pallas_src>
import functools

import jax
import jax.numpy as jnp
from jax.experimental import pallas as pl
from jax.experimental.pallas import tpu as pltpu

MODULE_FACTOR = 0.5   # Conformer half-step residual
INPUT_FACTOR = 1.0


def _round_up(n: int, m: int) -> int:
    return ((n + m - 1) // m) * m


def _physical_vmem_bytes() -> int:
    try:
        return int(pltpu.get_tpu_info().vmem_capacity_bytes)
    except Exception:
        return 64 << 20   # conservative: v7x per-TensorCore VMEM


def prepare_params(w, b, compute_dtype=jnp.bfloat16):
    """Cast linear params once at init time (not per call, per perf review)."""
    return w.astype(compute_dtype), b.astype(jnp.float32)


# ---------------------------------------------------------------------------
# Kernels
# ---------------------------------------------------------------------------
def _resident_kernel(x_ref, w_ref, b_ref, o_ref, *, module_factor, input_factor):
    # x_ref: (TM, H) input dtype   w_ref: (H, H) resident compute dtype
    # b_ref: (1, H)                o_ref: (TM, H) out dtype
    x = x_ref[...]
    y = jnp.dot(x.astype(w_ref.dtype), w_ref[...],
                preferred_element_type=jnp.float32)
    y = y + b_ref[...].astype(jnp.float32)
    out = y * module_factor + x.astype(jnp.float32) * input_factor
    o_ref[...] = out.astype(o_ref.dtype)


def _tiled_kernel(x_lhs_ref, w_ref, b_ref, x_res_ref, o_ref, acc_ref, *,
                  module_factor, input_factor):
    # Grid: (M tiles, N tiles, K tiles); K is the reduction axis (last).
    k = pl.program_id(2)

    @pl.when(k == 0)
    def _():
        acc_ref[...] = jnp.zeros_like(acc_ref)

    acc_ref[...] += jnp.dot(x_lhs_ref[...].astype(w_ref.dtype), w_ref[...],
                            preferred_element_type=jnp.float32)

    @pl.when(k == pl.num_programs(2) - 1)
    def _():
        y = acc_ref[...] + b_ref[...].astype(jnp.float32)
        out = y * module_factor + x_res_ref[...].astype(jnp.float32) * input_factor
        o_ref[...] = out.astype(o_ref.dtype)


# ---------------------------------------------------------------------------
# Tile-size selection (VMEM-budgeted)
# ---------------------------------------------------------------------------
def _choose_tm_resident(M, H, x_b, o_b, w_resident_bytes, budget, requested):
    per_row = 2 * H * (x_b + o_b)                      # double-buffered x + out tiles
    avail = max(budget - w_resident_bytes - 2 * 8 * _round_up(H, 128) * 4, 8 * per_row)
    tm_cap = max(8, avail // per_row)
    if requested is not None:
        tm = int(requested)
    else:
        tm = 1024 if H <= 1024 else (512 if H <= 2048 else 256)
        if M >= 4 * 128:
            # >= 4 grid steps: amortize ~0.35us/step overhead, let the
            # "parallel" M axis balance both v7x TensorCores.
            tm = min(tm, max(128, _round_up(pl.cdiv(M, 4), 128)))
    tm = min(tm, tm_cap, _round_up(M, 8))
    tm = (tm // 128) * 128 if tm >= 128 else (tm // 8) * 8
    return max(8, tm)


def _choose_tm_tiled(M, tn, tk, x_b, o_b, w_b, budget, requested):
    per_row = 2 * tk * x_b + 2 * tn * x_b + 2 * tn * o_b + tn * 4
    fixed = 2 * tk * tn * w_b + 2 * 8 * tn * 4
    avail = max(budget - fixed, 8 * per_row)
    tm_cap = max(8, avail // per_row)
    tm = int(requested) if requested is not None else 512
    tm = min(tm, tm_cap, _round_up(M, 8))
    tm = (tm // 128) * 128 if tm >= 128 else (tm // 8) * 8
    return max(8, tm)


def _tile_divisor(H):
    for t in (512, 256, 128):
        if H % t == 0:
            return t
    return None


# ---------------------------------------------------------------------------
# Wrapper
# ---------------------------------------------------------------------------
def residual_connection(x, w, b, *, module_factor=MODULE_FACTOR,
                        input_factor=INPUT_FACTOR, out_dtype=None,
                        tm=None, tn=None, tk=None, force_tiled=False,
                        weight_resident_max_bytes=24 << 20):
    """Fused (x @ w + b) * module_factor + x * input_factor.

    x: (B, T, H), w: (H, H) already in the MXU compute dtype (see
    prepare_params), b: (H,)  ->  (B, T, H)
    """
    B, T, H = x.shape
    assert w.shape == (H, H) and b.shape == (H,)
    M = B * T
    out_dtype = x.dtype if out_dtype is None else jnp.dtype(out_dtype)

    xm = x.reshape(M, H)
    b2d = b.reshape(1, H)

    x_b = x.dtype.itemsize
    o_b = jnp.dtype(out_dtype).itemsize
    w_b = w.dtype.itemsize
    w_bytes = H * H * w_b

    physical = _physical_vmem_bytes()
    budget = int(0.70 * physical)

    kernel_kwargs = dict(module_factor=float(module_factor),
                         input_factor=float(input_factor))
    cost = pl.CostEstimate(
        flops=2 * M * H * H, transcendentals=0,
        bytes_accessed=M * H * x_b + w_bytes + H * 4 + M * H * o_b)

    use_tiled = (force_tiled or w_bytes > weight_resident_max_bytes) and H % 128 == 0

    if not use_tiled:
        # ---- Resident-weight path: 1-D grid over M, W/bias stay in VMEM. ----
        tm_r = _choose_tm_resident(M, H, x_b, o_b, w_bytes, budget, tm)
        # Conservative limit: assume double-buffered W/bias in case Buffered(1)
        # is not honoured by this toolchain.
        need = (2 * tm_r * H * (x_b + o_b)
                + 2 * (w_bytes + 8 * _round_up(H, 128) * 4))
        vmem_limit = min(max(int(need * 1.3) + (4 << 20), 16 << 20), physical)
        kernel = functools.partial(_resident_kernel, **kernel_kwargs)
        grid = (pl.cdiv(M, tm_r),)   # ragged last tile handled by Pallas masking

        def build(single_buffer):
            const_kw = {"pipeline_mode": pl.Buffered(1)} if single_buffer else {}
            return pl.pallas_call(
                kernel,
                out_shape=jax.ShapeDtypeStruct((M, H), out_dtype),
                grid_spec=pl.GridSpec(
                    grid=grid,
                    in_specs=[
                        pl.BlockSpec((tm_r, H), lambda i: (i, 0)),            # x tile
                        pl.BlockSpec((H, H), lambda i: (0, 0), **const_kw),   # W resident
                        pl.BlockSpec((1, H), lambda i: (0, 0), **const_kw),   # bias resident
                    ],
                    out_specs=pl.BlockSpec((tm_r, H), lambda i: (i, 0)),
                ),
                compiler_params=pltpu.CompilerParams(
                    dimension_semantics=("parallel",),
                    vmem_limit_bytes=vmem_limit,
                ),
                cost_estimate=cost,
            )

        try:
            out = build(True)(xm, w, b2d)
        except Exception:
            # pipeline_mode / Buffered(1) unsupported -> default double buffering.
            out = build(False)(xm, w, b2d)
        return out.reshape(B, T, H)

    # ---- Tiled path: M/N/K grid + f32 accumulator (large H / v7x VMEM). ----
    tn_t = int(tn) if tn is not None else _tile_divisor(H)
    tk_t = int(tk) if tk is not None else _tile_divisor(H)
    tm_t = _choose_tm_tiled(M, tn_t, tk_t, x_b, o_b, w_b, budget, tm)
    need = (2 * tm_t * tk_t * x_b + 2 * tk_t * tn_t * w_b + 2 * tm_t * tn_t * x_b
            + 2 * tm_t * tn_t * o_b + tm_t * tn_t * 4 + 2 * 8 * tn_t * 4)
    vmem_limit = min(max(int(need * 1.3) + (4 << 20), 16 << 20), physical)
    kernel = functools.partial(_tiled_kernel, **kernel_kwargs)
    grid = (pl.cdiv(M, tm_t), H // tn_t, H // tk_t)

    out = pl.pallas_call(
        kernel,
        out_shape=jax.ShapeDtypeStruct((M, H), out_dtype),
        grid_spec=pltpu.PrefetchScalarGridSpec(
            num_scalar_prefetch=0,
            grid=grid,
            in_specs=[
                pl.BlockSpec((tm_t, tk_t), lambda i, j, k: (i, k)),   # x as matmul LHS
                pl.BlockSpec((tk_t, tn_t), lambda i, j, k: (k, j)),   # W tile
                pl.BlockSpec((1, tn_t), lambda i, j, k: (0, j)),      # bias tile
                pl.BlockSpec((tm_t, tn_t), lambda i, j, k: (i, j)),   # x residual slice
            ],
            out_specs=pl.BlockSpec((tm_t, tn_t), lambda i, j, k: (i, j)),
            scratch_shapes=[pltpu.VMEM((tm_t, tn_t), jnp.float32)],
        ),
        compiler_params=pltpu.CompilerParams(
            dimension_semantics=("parallel", "parallel", "arbitrary"),
            vmem_limit_bytes=vmem_limit,
        ),
        cost_estimate=cost,
    )(xm, w, b2d, xm)
    return out.reshape(B, T, H)


# ---------------------------------------------------------------------------
# Reference + tests
# ---------------------------------------------------------------------------
def _reference(x, w, b, *, module_factor=MODULE_FACTOR, input_factor=INPUT_FACTOR,
               compute_dtype=jnp.float32):
    xc = x.astype(compute_dtype).astype(jnp.float32)
    wc = w.astype(compute_dtype).astype(jnp.float32)
    y = jnp.einsum("bth,hk->btk", xc, wc) + b.astype(jnp.float32)
    out = y * module_factor + x.astype(jnp.float32) * input_factor
    return out.astype(x.dtype)


if __name__ == "__main__":
    key = jax.random.PRNGKey(0)
    ks = jax.random.split(key, 9)

    # 1) Small Conformer-ish shape, f32 MXU path (tight check, resident path).
    batch, seq, hidden = 2, 8, 32
    x = jax.random.normal(ks[0], (batch, seq, hidden), dtype=jnp.float32)
    w = jax.random.normal(ks[1], (hidden, hidden), dtype=jnp.float32) * hidden ** -0.5
    b = jax.random.normal(ks[2], (hidden,), dtype=jnp.float32) * 0.01

    out_f32 = residual_connection(x, w, b)
    jax.block_until_ready(out_f32)
    ref_f32 = _reference(x, w, b)
    assert out_f32.shape == (batch, seq, hidden)
    assert jnp.allclose(out_f32, ref_f32, atol=1e-5, rtol=1e-5), "f32 path mismatch"

    # 2) bf16 resident path with weights prepared once (hoisted cast).
    w_bf16, b_prep = prepare_params(w, b, compute_dtype=jnp.bfloat16)
    out_bf16 = residual_connection(x, w_bf16, b_prep)
    jax.block_until_ready(out_bf16)
    ref_bf16 = _reference(x, w, b, compute_dtype=jnp.bfloat16)
    assert jnp.allclose(out_bf16, ref_bf16, atol=2e-2, rtol=2e-2), "bf16 path mismatch"

    # 3) Ragged M (no host-side pad/slice), multi-step pipelined grid.
    b3, t3, h3 = 3, 37, 96          # M = 111, tm = 64 -> 2 grid steps, ragged last tile
    x3 = jax.random.normal(ks[3], (b3, t3, h3), dtype=jnp.float32)
    w3 = jax.random.normal(ks[4], (h3, h3), dtype=jnp.float32) * h3 ** -0.5
    bb3 = jax.random.normal(ks[5], (h3,), dtype=jnp.float32) * 0.01
    out3 = residual_connection(x3, w3, bb3, tm=64)
    jax.block_until_ready(out3)
    ref3 = _reference(x3, w3, bb3)
    assert out3.shape == (b3, t3, h3)
    assert jnp.allclose(out3, ref3, atol=1e-4, rtol=1e-4), "ragged-M path mismatch"

    # 4) Forced M/N/K-tiled path (large-H / v7x code path) at a modest size.
    b4, t4, h4 = 2, 40, 256
    x4 = jax.random.normal(ks[6], (b4, t4, h4), dtype=jnp.float32)
    w4 = jax.random.normal(ks[7], (h4, h4), dtype=jnp.float32) * h4 ** -0.5
    bb4 = jax.random.normal(ks[8], (h4,), dtype=jnp.float32) * 0.01
    w4_bf16, b4_prep = prepare_params(w4, bb4, compute_dtype=jnp.bfloat16)
    out4 = residual_connection(x4, w4_bf16, b4_prep, force_tiled=True, tn=128, tk=128)
    jax.block_until_ready(out4)
    ref4 = _reference(x4, w4, bb4, compute_dtype=jnp.bfloat16)
    assert out4.shape == (b4, t4, h4)
    assert jnp.allclose(out4, ref4, atol=2e-2, rtol=2e-2), "tiled path mismatch"

    print("KERNEL_OK")
</pallas_src>

<mosaic_0001>
module attributes {stable_mosaic.version = 11 : i64} {
  func.func @_resident_kernel(%arg0: i32, %arg1: memref<16x32xf32, #tpu.memory_space<vmem>>, %arg2: memref<32x32xf32, #tpu.memory_space<vmem>>, %arg3: memref<1x32xf32, #tpu.memory_space<vmem>>, %arg4: memref<16x32xf32, #tpu.memory_space<vmem>>) attributes {dimension_semantics = [#tpu.dimension_semantics<parallel>], iteration_bounds = array<i64: 1>, scalar_prefetch = 0 : i64, scratch_operands = 0 : i64, tpu.core_type = #tpu.core_type<tc>, window_params = [{transform_indices = @transform_0, window_bounds = array<i64: 16, 32>}, {pipeline_mode = #tpu.pipeline_mode<synchronous>, transform_indices = @transform_1, window_bounds = array<i64: 32, 32>}, {pipeline_mode = #tpu.pipeline_mode<synchronous>, transform_indices = @transform_2, window_bounds = array<i64: 1, 32>}, {transform_indices = @transform_3, window_bounds = array<i64: 16, 32>}]} {
    %c0 = arith.constant 0 : index
    %c0_0 = arith.constant 0 : index
    %0 = vector.load %arg1[%c0, %c0_0] : memref<16x32xf32, #tpu.memory_space<vmem>>, vector<16x32xf32>
    %c0_1 = arith.constant 0 : index
    %c0_2 = arith.constant 0 : index
    %1 = vector.load %arg2[%c0_1, %c0_2] : memref<32x32xf32, #tpu.memory_space<vmem>>, vector<32x32xf32>
    %cst = arith.constant dense<0.000000e+00> : vector<16x32xf32>
    %2 = tpu.matmul %0, %1, %cst {dimension_numbers = #tpu.dot_dimension_numbers<[1], [0], [0], [1], [0, 0, 1, 1], [], []>} : vector<16x32xf32>, vector<32x32xf32>, vector<16x32xf32> -> vector<16x32xf32>
    %c0_3 = arith.constant 0 : index
    %c0_4 = arith.constant 0 : index
    %3 = vector.load %arg3[%c0_3, %c0_4] : memref<1x32xf32, #tpu.memory_space<vmem>>, vector<1x32xf32>
    %4 = vector.broadcast %3 : vector<1x32xf32> to vector<16x32xf32>
    %5 = arith.addf %2, %4 : vector<16x32xf32>
    %cst_5 = arith.constant 5.000000e-01 : f32
    %6 = vector.broadcast %cst_5 : f32 to vector<16x32xf32>
    %7 = arith.mulf %5, %6 : vector<16x32xf32>
    %cst_6 = arith.constant 1.000000e+00 : f32
    %8 = vector.broadcast %cst_6 : f32 to vector<16x32xf32>
    %9 = arith.mulf %0, %8 : vector<16x32xf32>
    %10 = arith.addf %7, %9 : vector<16x32xf32>
    %c0_7 = arith.constant 0 : index
    %c0_8 = arith.constant 0 : index
    %11 = vector.load %arg4[%c0_7, %c0_8] : memref<16x32xf32, #tpu.memory_space<vmem>>, vector<16x32xf32>
    tpu.vector_store %arg4[%c0_7, %c0_8], %10 {strides = array<i32>} : memref<16x32xf32, #tpu.memory_space<vmem>>, vector<16x32xf32>,
    return
  }
  func.func @transform_0(%arg0: i32) -> (i32, i32) {
    %c0_i32 = arith.constant 0 : i32
    %c0_i32_0 = arith.constant 0 : i32
    return %arg0, %c0_i32 : i32, i32
  }
  func.func @transform_1(%arg0: i32) -> (i32, i32) {
    %c0_i32 = arith.constant 0 : i32
    %c0_i32_0 = arith.constant 0 : i32
    %c0_i32_1 = arith.constant 0 : i32
    return %c0_i32, %c0_i32_0 : i32, i32
  }
  func.func @transform_2(%arg0: i32) -> (i32, i32) {
    %c0_i32 = arith.constant 0 : i32
    %c0_i32_0 = arith.constant 0 : i32
    %c0_i32_1 = arith.constant 0 : i32
    return %c0_i32, %c0_i32_0 : i32, i32
  }
  func.func @transform_3(%arg0: i32) -> (i32, i32) {
    %c0_i32 = arith.constant 0 : i32
    %c0_i32_0 = arith.constant 0 : i32
    return %arg0, %c0_i32 : i32, i32
  }
}

module attributes {stable_mosaic.version = 11 : i64} {
  func.func @_resident_kernel(%arg0: i32, %arg1: memref<16x32xf32, #tpu.memory_space<vmem>>, %arg2: memref<32x32xf32, #tpu.memory_space<vmem>>, %arg3: memref<1x32xf32, #tpu.memory_space<vmem>>, %arg4: memref<16x32xf32, #tpu.memory_space<vmem>>) attributes {dimension_semantics = [#tpu.dimension_semantics<parallel>], iteration_bounds = array<i64: 1>, scalar_prefetch = 0 : i64, scratch_operands = 0 : i64, tpu.core_type = #tpu.core_type<tc>, window_params = [{transform_indices = @transform_0, window_bounds = array<i64: 16, 32>}, {pipeline_mode = #tpu.pipeline_mode<synchronous>, transform_indices = @transform_1, window_bounds = array<i64: 32, 32>}, {pipeline_mode = #tpu.pipeline_mode<synchronous>, transform_indices = @transform_2, window_bounds = array<i64: 1, 32>}, {transform_indices = @transform_3, window_bounds = array<i64: 16, 32>}]} {
    %c0 = arith.constant 0 : index
    %c0_0 = arith.constant 0 : index
    %0 = vector.load %arg1[%c0, %c0_0] : memref<16x32xf32, #tpu.memory_space<vmem>>, vector<16x32xf32>
    %c0_1 = arith.constant 0 : index
    %c0_2 = arith.constant 0 : index
    %1 = vector.load %arg2[%c0_1, %c0_2] : memref<32x32xf32, #tpu.memory_space<vmem>>, vector<32x32xf32>
    %cst = arith.constant dense<0.000000e+00> : vector<16x32xf32>
    %2 = tpu.matmul %0, %1, %cst {dimension_numbers = #tpu.dot_dimension_numbers<[1], [0], [0], [1], [0, 0, 1, 1], [], []>} : vector<16x32xf32>, vector<32x32xf32>, vector<16x32xf32> -> vector<16x32xf32>
    %c0_3 = arith.constant 0 : index
    %c0_4 = arith.constant 0 : index
    %3 = vector.load %arg3[%c0_3, %c0_4] : memref<1x32xf32, #tpu.memory_space<vmem>>, vector<1x32xf32>
    %4 = vector.broadcast %3 : vector<1x32xf32> to vector<16x32xf32>
    %5 = arith.addf %2, %4 : vector<16x32xf32>
    %cst_5 = arith.constant 5.000000e-01 : f32
    %6 = vector.broadcast %cst_5 : f32 to vector<16x32xf32>
    %7 = arith.mulf %5, %6 : vector<16x32xf32>
    %cst_6 = arith.constant 1.000000e+00 : f32
    %8 = vector.broadcast %cst_6 : f32 to vector<16x32xf32>
    %9 = arith.mulf %0, %8 : vector<16x32xf32>
    %10 = arith.addf %7, %9 : vector<16x32xf32>
    %c0_7 = arith.constant 0 : index
    %c0_8 = arith.constant 0 : index
    %11 = vector.load %arg4[%c0_7, %c0_8] : memref<16x32xf32, #tpu.memory_space<vmem>>, vector<16x32xf32>
    tpu.vector_store %arg4[%c0_7, %c0_8], %10 {strides = array<i32>} : memref<16x32xf32, #tpu.memory_space<vmem>>, vector<16x32xf32>,
    return
  }
  func.func @transform_0(%arg0: i32) -> (i32, i32) {
    %c0_i32 = arith.constant 0 : i32
    %c0_i32_0 = arith.constant 0 : i32
    return %arg0, %c0_i32 : i32, i32
  }
  func.func @transform_1(%arg0: i32) -> (i32, i32) {
    %c0_i32 = arith.constant 0 : i32
    %c0_i32_0 = arith.constant 0 : i32
    %c0_i32_1 = arith.constant 0 : i32
    return %c0_i32, %c0_i32_0 : i32, i32
  }
  func.func @transform_2(%arg0: i32) -> (i32, i32) {
    %c0_i32 = arith.constant 0 : i32
    %c0_i32_0 = arith.constant 0 : i32
    %c0_i32_1 = arith.constant 0 : i32
    return %c0_i32, %c0_i32_0 : i32, i32
  }
  func.func @transform_3(%arg0: i32) -> (i32, i32) {
    %c0_i32 = arith.constant 0 : i32
    %c0_i32_0 = arith.constant 0 : i32
    return %arg0, %c0_i32 : i32, i32
  }
}

</mosaic_0001>

<bundles_post_ra>
// kernel: tpu_custom_call.1
= control target key start
LH: loop header
LB: loop body
LE: loop exit
PB: predicated region body
PF: predicated region fallthrough
CT: control target
= control target key end

     0   :  { %8 = vsyncpa [#allocation3], 0  ;;  %s303_s0 = inlined_call_operand.hbm [shape: f32[16,32], index: 0, kind: input, shape index: {}]   ;;  %s304_s1 = inlined_call_operand.hbm [shape: f32[32,32], index: 1, kind: input, shape index: {}]   ;;  %s305_s2 = inlined_call_operand.vmem [shape: f32[1,32], index: 2, kind: input, shape index: {}]   ;;  %s306_s3 = inlined_call_operand.hbm [shape: f32[16,32], index: 3, kind: output, shape index: {}]  }
   0x1   :  { %9 = vsyncpa [#allocation6], 0 }
   0x2   :  { %10 = vsyncpa [#allocation4], 0  ;;  %s253_s12 = smov [#allocation2]  }
   0x3   :  { %s16_s13 = sshll.u32 %s253_s12, 4  ;;  %s17_s13 = int_to_ptr.vmem [resolvable:$true] %s16_s13 }
   0x4   :  { %s195_s14 = scalar_lea.vmem %s17_s13, 256  ;;  %p200_p1 = scmp.lt.s32.totalorder %s17_s13, %s17_s13 }
   0x5   :  { %p196_p0 = scmp.ne.s32.totalorder %s17_s13, %s195_s14  ;;  %p201_p2 = scmp.lt.s32.totalorder %s195_s14, %s195_s14 }
   0x7   :  { %p202_p3 = por %p201_p2, %p200_p1 }
   0x9   :  { %p203_p4 = pnand %p202_p3, %p196_p0 }
   0xb   :  { %206 = shalt.err (!%p203_p4)
}
   0xc   :  { %s254_s15 = smov 128   ;;  %s255_s16 = smov 8  }
   0xd   :  { %22 = dma.hbm_to_vmem [thread:$0]  %s303_s0, 256, %s17_s13, [#allocation3], %s254_s15, %s254_s15, %s255_s16  }
   0xe   :  { %s256_s19 = smov [#allocation5]  }
   0xf   :  { %s28_s20 = sshll.u32 %s256_s19, 4  ;;  %s29_s20 = int_to_ptr.vmem [resolvable:$true] %s28_s20 }
  0x10   :  { %s215_s21 = scalar_lea.vmem %s29_s20, 512  ;;  %p220_p6 = scmp.lt.s32.totalorder %s29_s20, %s29_s20 }
  0x11   :  { %p216_p5 = scmp.ne.s32.totalorder %s29_s20, %s215_s21  ;;  %p221_p7 = scmp.lt.s32.totalorder %s215_s21, %s215_s21 }
  0x13   :  { %p222_p8 = por %p221_p7, %p220_p6 }
  0x15   :  { %p223_p9 = pnand %p222_p8, %p216_p5 }
  0x17   :  { %226 = shalt.err (!%p223_p9)
}
  0x18   :  { %34 = dma.hbm_to_vmem [thread:$0]  %s304_s1, 512, %s29_s20, [#allocation6], %s254_s15, %s254_s15, %s255_s16  }
  0x19   :  { %247 = dma.done.wait [#allocation3], 256  }
  0x1a   :  { %248 = vsyncadd [#allocation3], 4294967040 }
  0x1b   :  { %249 = dma.done.wait [#allocation6], 512  }
  0x1c   :  { %250 = vsyncadd [#allocation6], 4294966784  ;;  %vm56_vm0 = vcmask 261120   ;;  %v48_v0 = vld [vmem:[#allocation5 + $0x18] sm:$0xff]  ;;  %v47_v1 = vld [vmem:[#allocation5 + $0x10] sm:$0xff]  ;;  %s257_s24 = smov [#allocation7]  }
  0x1d   :  { %171 = vmatprep.subr.mxu0 %v48_v0  ;;  %v43_v2 = vld [vmem:[#allocation2] sm:$0xff]  ;;  %v46_v3 = vld [vmem:[#allocation5 + $0x8] sm:$0xff]  ;;  %v45_v4 = vld [vmem:[#allocation5] sm:$0xff]  ;;  %s149_s25 = sshll.u32 %s257_s24, 4  ;;  %s150_s25 = int_to_ptr.vmem [resolvable:$true] %s149_s25 }
  0x1e   :  { %172 = vmatpush3.msra.mxu0 %v48_v0  ;;  %179 = vmatprep.mubr.msk.f32.mxu0 %vm56_vm0, %v43_v2  ;;  %v44_v5 = vld [vmem:[#allocation2 + $0x8] sm:$0xff]  ;;  %v162_v6 = vld [vmem:[%s305_s2] ss:$0 sm:$0xff]  ;;  %s227_s26 = scalar_lea.vmem %s150_s25, 256  ;;  %p232_p11 = scmp.lt.s32.totalorder %s150_s25, %s150_s25 }
  0x1f   :  { %173 = vmatprep.subr.mxu0 %v47_v1  ;;  %p228_p10 = scmp.ne.s32.totalorder %s150_s25, %s227_s26  ;;  %p233_p12 = scmp.lt.s32.totalorder %s227_s26, %s227_s26 }
  0x20   :  { %174 = vmatpush3.msra.mxu0 %v47_v1 }
  0x21   :  { %175 = vmatprep.subr.mxu0 %v46_v3  ;;  %p234_p13 = por %p233_p12, %p232_p11 }
  0x22   :  { %176 = vmatpush3.msra.mxu0 %v46_v3 }
  0x23   :  { %177 = vmatprep.subr.mxu0 %v45_v4  ;;  %p235_p0 = pnand %p234_p13, %p228_p10 }
  0x24   :  { %178 = vmatpush3.msra.mxu0 %v45_v4 }
  0x25   :  { %180 = vmatmul.mubr.msk.f32.vlgmr.msra.gmra.mxu0 %vm56_vm0, %v44_v5 }
  0xe5   :  { %v181_v7 = vpop.f32.mrf.mxu0 }
  0xe6   :  { %v135_v8 = vadd.f32 %v181_v7, %v162_v6 }
  0xe7   :  { %v129_v9 = vpop.f32.mrf.mxu0 }
  0xe8   :  { %v139_v10 = vmul.f32 0.5, %v135_v8  ;;  %v130_v11 = vadd.f32 %v162_v6, %v129_v9 }
  0xea   :  { %v141_v12 = vadd.f32 %v139_v10, %v44_v5  ;;  %v138_v13 = vmul.f32 0.5, %v130_v11 }
  0xec   :  { %143 = vst.msk [vmem:[#allocation7 + $0x8] sm:$0xff] %vm56_vm0, %v141_v12  ;;  %v140_v14 = vadd.f32 %v138_v13, %v43_v2 }
  0xee   :  { %142 = vst.msk [vmem:[#allocation7] sm:$0xff] %vm56_vm0, %v140_v14 }
  0xef   :  { %238 = shalt.err (!%p235_p0)
}
  0xf0   :  { %155 = dma.vmem_to_hbm [thread:$0]  %s150_s25, 256, %s306_s3, [#allocation4], %s254_s15, %s254_s15, %s255_s16  }
  0xf1   :  { %251 = dma.done.wait [#allocation4], 256  }
  0xf2   :  { %252 = vsyncadd [#allocation4], 4294967040 }
  0xf3   :  { %159 = vsyncpa [#allocation3], 1 }
  0xf4   :  { %160 = vsyncpa [#allocation6], 1 }
  0xf5   :  { %161 = vsyncpa [#allocation4], 1 }

// kernel: tpu_custom_call.1
= control target key start
LH: loop header
LB: loop body
LE: loop exit
PB: predicated region body
PF: predicated region fallthrough
CT: control target
= control target key end

     0   :  { %8 = vsyncpa [#allocation3], 0  ;;  %s303_s0 = inlined_call_operand.hbm [shape: f32[16,32], index: 0, kind: input, shape index: {}]   ;;  %s304_s1 = inlined_call_operand.hbm [shape: f32[32,32], index: 1, kind: input, shape index: {}]   ;;  %s305_s2 = inlined_call_operand.vmem [shape: f32[1,32], index: 2, kind: input, shape index: {}]   ;;  %s306_s3 = inlined_call_operand.hbm [shape: f32[16,32], index: 3, kind: output, shape index: {}]  }
   0x1   :  { %9 = vsyncpa [#allocation6], 0 }
   0x2   :  { %10 = vsyncpa [#allocation4], 0  ;;  %s253_s12 = smov [#allocation2]  }
   0x3   :  { %s16_s13 = sshll.u32 %s253_s12, 4  ;;  %s17_s13 = int_to_ptr.vmem [resolvable:$true] %s16_s13 }
   0x4   :  { %s195_s14 = scalar_lea.vmem %s17_s13, 256  ;;  %p200_p1 = scmp.lt.s32.totalorder %s17_s13, %s17_s13 }
   0x5   :  { %p196_p0 = scmp.ne.s32.totalorder %s17_s13, %s195_s14  ;;  %p201_p2 = scmp.lt.s32.totalorder %s195_s14, %s195_s14 }
   0x7   :  { %p202_p3 = por %p201_p2, %p200_p1 }
   0x9   :  { %p203_p4 = pnand %p202_p3, %p196_p0 }
   0xb   :  { %206 = shalt.err (!%p203_p4)
}
   0xc   :  { %s254_s15 = smov 128   ;;  %s255_s16 = smov 8  }
   0xd   :  { %22 = dma.hbm_to_vmem [thread:$0]  %s303_s0, 256, %s17_s13, [#allocation3], %s254_s15, %s254_s15, %s255_s16  }
   0xe   :  { %s256_s19 = smov [#allocation5]  }
   0xf   :  { %s28_s20 = sshll.u32 %s256_s19, 4  ;;  %s29_s20 = int_to_ptr.vmem [resolvable:$true] %s28_s20 }
  0x10   :  { %s215_s21 = scalar_lea.vmem %s29_s20, 512  ;;  %p220_p6 = scmp.lt.s32.totalorder %s29_s20, %s29_s20 }
  0x11   :  { %p216_p5 = scmp.ne.s32.totalorder %s29_s20, %s215_s21  ;;  %p221_p7 = scmp.lt.s32.totalorder %s215_s21, %s215_s21 }
  0x13   :  { %p222_p8 = por %p221_p7, %p220_p6 }
  0x15   :  { %p223_p9 = pnand %p222_p8, %p216_p5 }
  0x17   :  { %226 = shalt.err (!%p223_p9)
}
  0x18   :  { %34 = dma.hbm_to_vmem [thread:$0]  %s304_s1, 512, %s29_s20, [#allocation6], %s254_s15, %s254_s15, %s255_s16  }
  0x19   :  { %247 = dma.done.wait [#allocation3], 256  }
  0x1a   :  { %248 = vsyncadd [#allocation3], 4294967040 }
  0x1b   :  { %249 = dma.done.wait [#allocation6], 512  }
  0x1c   :  { %250 = vsyncadd [#allocation6], 4294966784  ;;  %vm56_vm0 = vcmask 261120   ;;  %v48_v0 = vld [vmem:[#allocation5 + $0x18] sm:$0xff]  ;;  %v47_v1 = vld [vmem:[#allocation5 + $0x10] sm:$0xff]  ;;  %s257_s24 = smov [#allocation7]  }
  0x1d   :  { %171 = vmatprep.subr.mxu0 %v48_v0  ;;  %v43_v2 = vld [vmem:[#allocation2] sm:$0xff]  ;;  %v46_v3 = vld [vmem:[#allocation5 + $0x8] sm:$0xff]  ;;  %v45_v4 = vld [vmem:[#allocation5] sm:$0xff]  ;;  %s149_s25 = sshll.u32 %s257_s24, 4  ;;  %s150_s25 = int_to_ptr.vmem [resolvable:$true] %s149_s25 }
  0x1e   :  { %172 = vmatpush3.msra.mxu0 %v48_v0  ;;  %179 = vmatprep.mubr.msk.f32.mxu0 %vm56_vm0, %v43_v2  ;;  %v44_v5 = vld [vmem:[#allocation2 + $0x8] sm:$0xff]  ;;  %v162_v6 = vld [vmem:[%s305_s2] ss:$0 sm:$0xff]  ;;  %s227_s26 = scalar_lea.vmem %s150_s25, 256  ;;  %p232_p11 = scmp.lt.s32.totalorder %s150_s25, %s150_s25 }
  0x1f   :  { %173 = vmatprep.subr.mxu0 %v47_v1  ;;  %p228_p10 = scmp.ne.s32.totalorder %s150_s25, %s227_s26  ;;  %p233_p12 = scmp.lt.s32.totalorder %s227_s26, %s227_s26 }
  0x20   :  { %174 = vmatpush3.msra.mxu0 %v47_v1 }
  0x21   :  { %175 = vmatprep.subr.mxu0 %v46_v3  ;;  %p234_p13 = por %p233_p12, %p232_p11 }
  0x22   :  { %176 = vmatpush3.msra.mxu0 %v46_v3 }
  0x23   :  { %177 = vmatprep.subr.mxu0 %v45_v4  ;;  %p235_p0 = pnand %p234_p13, %p228_p10 }
  0x24   :  { %178 = vmatpush3.msra.mxu0 %v45_v4 }
  0x25   :  { %180 = vmatmul.mubr.msk.f32.vlgmr.msra.gmra.mxu0 %vm56_vm0, %v44_v5 }
  0xe5   :  { %v181_v7 = vpop.f32.mrf.mxu0 }
  0xe6   :  { %v135_v8 = vadd.f32 %v181_v7, %v162_v6 }
  0xe7   :  { %v129_v9 = vpop.f32.mrf.mxu0 }
  0xe8   :  { %v139_v10 = vmul.f32 0.5, %v135_v8  ;;  %v130_v11 = vadd.f32 %v162_v6, %v129_v9 }
  0xea   :  { %v141_v12 = vadd.f32 %v139_v10, %v44_v5  ;;  %v138_v13 = vmul.f32 0.5, %v130_v11 }
  0xec   :  { %143 = vst.msk [vmem:[#allocation7 + $0x8] sm:$0xff] %vm56_vm0, %v141_v12  ;;  %v140_v14 = vadd.f32 %v138_v13, %v43_v2 }
  0xee   :  { %142 = vst.msk [vmem:[#allocation7] sm:$0xff] %vm56_vm0, %v140_v14 }
  0xef   :  { %238 = shalt.err (!%p235_p0)
}
  0xf0   :  { %155 = dma.vmem_to_hbm [thread:$0]  %s150_s25, 256, %s306_s3, [#allocation4], %s254_s15, %s254_s15, %s255_s16  }
  0xf1   :  { %251 = dma.done.wait [#allocation4], 256  }
  0xf2   :  { %252 = vsyncadd [#allocation4], 4294967040 }
  0xf3   :  { %159 = vsyncpa [#allocation3], 1 }
  0xf4   :  { %160 = vsyncpa [#allocation6], 1 }
  0xf5   :  { %161 = vsyncpa [#allocation4], 1 }

</bundles_post_ra>
